<compile_context>
chip_gen: v6e
topology: v6e:2x2x1
jax: 0.10.0
libtpu: 0.0.40
codegen_flags: <defaults>
</compile_context>

<pallas_src>
import jax
import jax.numpy as jnp
from jax.experimental import pallas as pl
from jax.experimental.pallas import tpu as pltpu


def _round_up(x, m):
    return (x + m - 1) // m * m


def generator_kernel(x_ref, w1_ref, b1_ref, w2_ref, b2_ref, o_ref):
    # In-kernel bf16 cast of x (VPU has huge slack; avoids a wrapper pass).
    x = x_ref[...].astype(jnp.bfloat16)
    # First linear: [tb, z](bf16) @ [z, H](bf16) -> f32 accumulate, + bias (f32).
    h = jnp.dot(x, w1_ref[...], preferred_element_type=jnp.float32)
    h = h + b1_ref[...]
    # LeakyReLU(0.1) in f32 on the VPU.
    h = jnp.where(h > 0, h, 0.1 * h)
    # Second linear: bf16 operands on the MXU, f32 accumulation, + bias (f32).
    y = jnp.dot(h.astype(jnp.bfloat16), w2_ref[...],
                preferred_element_type=jnp.float32)
    y = y + b2_ref[...]
    # Tanh (EUP, f32), then store (D=64: masked vst, fine in a mem-bound regime).
    o_ref[...] = jnp.tanh(y).astype(o_ref.dtype)


def prepare_generator_params(w1, b1, w2, b2):
    """One-time layout/dtype prep (hoisted out of the per-step path):
    bf16 MXU weights, f32 row-vector biases."""
    w1p = w1.astype(jnp.bfloat16)                         # [z_dim, H]
    w2p = w2.astype(jnp.bfloat16)                         # [H, D]
    b1p = b1.astype(jnp.float32).reshape(1, -1)           # [1, H]
    b2p = b2.astype(jnp.float32).reshape(1, -1)           # [1, D]
    return w1p, b1p, w2p, b2p


def _choose_tb(B, max_tb):
    # Small batches: a single grid step (lowest fixed overhead).
    if B <= 256:
        return _round_up(B, 8)
    # Large batches: aim for >=4 grid steps so both v7x TensorCores get work
    # (grid axis is "parallel"), while keeping tiles >=256 rows so the
    # ~0.35us per-step overhead stays amortized.
    tb = max(256, _round_up(pl.cdiv(B, 4), 8))
    return min(tb, max_tb)


def generator_forward(x, params, *, max_tb=2048):
    """x: [B, z_dim] f32; params = prepare_generator_params(w1, b1, w2, b2)."""
    w1p, b1p, w2p, b2p = params
    B, z_dim = x.shape
    _, H = w1p.shape
    _, D = w2p.shape
    out_dtype = x.dtype

    tb = _choose_tb(B, max_tb)
    Bp = _round_up(B, tb)

    # Only the batch dim is padded (zeros); no lane padding of z_dim / D.
    xp = x if Bp == B else jnp.pad(x, ((0, Bp - B), (0, 0)))

    grid = (Bp // tb,)
    cost = pl.CostEstimate(
        flops=2 * Bp * (z_dim * H + H * D),
        transcendentals=Bp * D,
        bytes_accessed=(Bp * z_dim * 4            # x (f32 in HBM)
                        + z_dim * H * 2 + H * 4   # w1 (bf16) + b1 (f32)
                        + H * D * 2 + D * 4       # w2 (bf16) + b2 (f32)
                        + Bp * D * 4),            # out (f32)
    )

    out = pl.pallas_call(
        generator_kernel,
        out_shape=jax.ShapeDtypeStruct((Bp, D), jnp.float32),
        grid_spec=pl.GridSpec(
            grid=grid,
            in_specs=[
                pl.BlockSpec((tb, z_dim), lambda i: (i, 0)),  # x tile (raw f32)
                pl.BlockSpec((z_dim, H), lambda i: (0, 0)),   # w1 (resident, bf16)
                pl.BlockSpec((1, H), lambda i: (0, 0)),       # b1 (f32)
                pl.BlockSpec((H, D), lambda i: (0, 0)),       # w2 (resident, bf16)
                pl.BlockSpec((1, D), lambda i: (0, 0)),       # b2 (f32)
            ],
            out_specs=pl.BlockSpec((tb, D), lambda i: (i, 0)),
        ),
        compiler_params=pltpu.CompilerParams(
            dimension_semantics=("parallel",)),
        cost_estimate=cost,
    )(xp, w1p, b1p, w2p, b2p)

    # Strip batch padding (no-op when Bp == B).
    out = out if Bp == B else out[:B]
    return out.astype(out_dtype)


def init_linear_params(key, fan_in, fan_out, dtype=jnp.float32):
    """Deterministic init mimicking torch.nn.Linear defaults
    (uniform(-1/sqrt(fan_in), 1/sqrt(fan_in)) for weight and bias)."""
    kw, kb = jax.random.split(key)
    bound = 1.0 / jnp.sqrt(jnp.array(fan_in, dtype=jnp.float32))
    # Stored as [in, out] (transposed relative to torch's [out, in]).
    w = jax.random.uniform(kw, (fan_in, fan_out), dtype, -bound, bound)
    b = jax.random.uniform(kb, (1, fan_out), dtype, -bound, bound)
    return w, b


def generator_reference(x, w1, b1, w2, b2):
    h = x @ w1 + b1
    h = jnp.where(h > 0, h, 0.1 * h)
    return jnp.tanh(h @ w2 + b2)


if __name__ == "__main__":
    # Small shapes consistent with the module: z_dim=32, hidden=256, img_dim=64.
    B, z_dim, hidden, img_dim = 16, 32, 256, 64

    key = jax.random.PRNGKey(0)
    kx, k1, k2 = jax.random.split(key, 3)

    x = jax.random.normal(kx, (B, z_dim), jnp.float32)
    w1, b1 = init_linear_params(k1, z_dim, hidden)
    w2, b2 = init_linear_params(k2, hidden, img_dim)

    # One-time parameter prep (hoisted out of the per-call path).
    params = prepare_generator_params(w1, b1, w2, b2)

    out = generator_forward(x, params)
    out = jax.block_until_ready(out)

    ref = generator_reference(x, w1, b1, w2, b2)
    assert out.shape == (B, img_dim)
    # bf16 MXU operands (f32 accumulation) -> relaxed tolerance vs f32 reference.
    assert jnp.allclose(out, ref, atol=2e-2, rtol=2e-2), "mismatch vs JAX reference"

    print("KERNEL_OK")
</pallas_src>

<mosaic_0001>
module attributes {stable_mosaic.version = 11 : i64} {
  func.func @generator_kernel(%arg0: i32, %arg1: memref<16x32xf32, #tpu.memory_space<vmem>>, %arg2: memref<32x256xbf16, #tpu.memory_space<vmem>>, %arg3: memref<1x256xf32, #tpu.memory_space<vmem>>, %arg4: memref<256x64xbf16, #tpu.memory_space<vmem>>, %arg5: memref<1x64xf32, #tpu.memory_space<vmem>>, %arg6: memref<16x64xf32, #tpu.memory_space<vmem>>) attributes {dimension_semantics = [#tpu.dimension_semantics<parallel>], iteration_bounds = array<i64: 1>, scalar_prefetch = 0 : i64, scratch_operands = 0 : i64, tpu.core_type = #tpu.core_type<tc>, window_params = [{transform_indices = @transform_0, window_bounds = array<i64: 16, 32>}, {pipeline_mode = #tpu.pipeline_mode<synchronous>, transform_indices = @transform_1, window_bounds = array<i64: 32, 256>}, {pipeline_mode = #tpu.pipeline_mode<synchronous>, transform_indices = @transform_2, window_bounds = array<i64: 1, 256>}, {pipeline_mode = #tpu.pipeline_mode<synchronous>, transform_indices = @transform_3, window_bounds = array<i64: 256, 64>}, {pipeline_mode = #tpu.pipeline_mode<synchronous>, transform_indices = @transform_4, window_bounds = array<i64: 1, 64>}, {transform_indices = @transform_5, window_bounds = array<i64: 16, 64>}]} {
    %c0 = arith.constant 0 : index
    %c0_0 = arith.constant 0 : index
    %0 = vector.load %arg1[%c0, %c0_0] : memref<16x32xf32, #tpu.memory_space<vmem>>, vector<16x32xf32>
    %1 = arith.truncf %0 : vector<16x32xf32> to vector<16x32xbf16>
    %c0_1 = arith.constant 0 : index
    %c0_2 = arith.constant 0 : index
    %2 = vector.load %arg2[%c0_1, %c0_2] : memref<32x256xbf16, #tpu.memory_space<vmem>>, vector<32x256xbf16>
    %cst = arith.constant dense<0.000000e+00> : vector<16x256xf32>
    %3 = tpu.matmul %1, %2, %cst {dimension_numbers = #tpu.dot_dimension_numbers<[1], [0], [0], [1], [0, 0, 1, 1], [], []>} : vector<16x32xbf16>, vector<32x256xbf16>, vector<16x256xf32> -> vector<16x256xf32>
    %c0_3 = arith.constant 0 : index
    %c0_4 = arith.constant 0 : index
    %4 = vector.load %arg3[%c0_3, %c0_4] : memref<1x256xf32, #tpu.memory_space<vmem>>, vector<1x256xf32>
    %5 = vector.broadcast %4 : vector<1x256xf32> to vector<16x256xf32>
    %6 = arith.addf %3, %5 : vector<16x256xf32>
    %cst_5 = arith.constant 0.000000e+00 : f32
    %7 = vector.broadcast %cst_5 : f32 to vector<16x256xf32>
    %8 = arith.cmpf ogt, %6, %7 : vector<16x256xf32>
    %cst_6 = arith.constant 1.000000e-01 : f32
    %9 = vector.broadcast %cst_6 : f32 to vector<16x256xf32>
    %10 = arith.mulf %9, %6 : vector<16x256xf32>
    %11 = arith.select %8, %6, %10 : vector<16x256xi1>, vector<16x256xf32>
    %12 = arith.truncf %11 : vector<16x256xf32> to vector<16x256xbf16>
    %c0_7 = arith.constant 0 : index
    %c0_8 = arith.constant 0 : index
    %13 = vector.load %arg4[%c0_7, %c0_8] : memref<256x64xbf16, #tpu.memory_space<vmem>>, vector<256x64xbf16>
    %cst_9 = arith.constant dense<0.000000e+00> : vector<16x64xf32>
    %14 = tpu.matmul %12, %13, %cst_9 {dimension_numbers = #tpu.dot_dimension_numbers<[1], [0], [0], [1], [0, 0, 1, 1], [], []>} : vector<16x256xbf16>, vector<256x64xbf16>, vector<16x64xf32> -> vector<16x64xf32>
    %c0_10 = arith.constant 0 : index
    %c0_11 = arith.constant 0 : index
    %15 = vector.load %arg5[%c0_10, %c0_11] : memref<1x64xf32, #tpu.memory_space<vmem>>, vector<1x64xf32>
    %16 = vector.broadcast %15 : vector<1x64xf32> to vector<16x64xf32>
    %17 = arith.addf %14, %16 : vector<16x64xf32>
    %18 = math.tanh %17 : vector<16x64xf32>
    %c0_12 = arith.constant 0 : index
    %c0_13 = arith.constant 0 : index
    %19 = vector.load %arg6[%c0_12, %c0_13] : memref<16x64xf32, #tpu.memory_space<vmem>>, vector<16x64xf32>
    tpu.vector_store %arg6[%c0_12, %c0_13], %18 {strides = array<i32>} : memref<16x64xf32, #tpu.memory_space<vmem>>, vector<16x64xf32>,
    return
  }
  func.func @transform_0(%arg0: i32) -> (i32, i32) {
    %c0_i32 = arith.constant 0 : i32
    %c0_i32_0 = arith.constant 0 : i32
    return %arg0, %c0_i32 : i32, i32
  }
  func.func @transform_1(%arg0: i32) -> (i32, i32) {
    %c0_i32 = arith.constant 0 : i32
    %c0_i32_0 = arith.constant 0 : i32
    %c0_i32_1 = arith.constant 0 : i32
    return %c0_i32, %c0_i32_0 : i32, i32
  }
  func.func @transform_2(%arg0: i32) -> (i32, i32) {
    %c0_i32 = arith.constant 0 : i32
    %c0_i32_0 = arith.constant 0 : i32
    %c0_i32_1 = arith.constant 0 : i32
    return %c0_i32, %c0_i32_0 : i32, i32
  }
  func.func @transform_3(%arg0: i32) -> (i32, i32) {
    %c0_i32 = arith.constant 0 : i32
    %c0_i32_0 = arith.constant 0 : i32
    %c0_i32_1 = arith.constant 0 : i32
    return %c0_i32, %c0_i32_0 : i32, i32
  }
  func.func @transform_4(%arg0: i32) -> (i32, i32) {
    %c0_i32 = arith.constant 0 : i32
    %c0_i32_0 = arith.constant 0 : i32
    %c0_i32_1 = arith.constant 0 : i32
    return %c0_i32, %c0_i32_0 : i32, i32
  }
  func.func @transform_5(%arg0: i32) -> (i32, i32) {
    %c0_i32 = arith.constant 0 : i32
    %c0_i32_0 = arith.constant 0 : i32
    return %arg0, %c0_i32 : i32, i32
  }
}

</mosaic_0001>

<bundles_post_ra>
// kernel: tpu_custom_call.1
= control target key start
LH: loop header
LB: loop body
LE: loop exit
PB: predicated region body
PF: predicated region fallthrough
CT: control target
= control target key end

     0   :  { %v415_v2 = vmov 0   ;;  %vm61_vm0 = vcmask 261120   ;;  %s524_s0 = inlined_call_operand.vmem [shape: f32[16,32], index: 0, kind: input, shape index: {}]   ;;  %s525_s1 = inlined_call_operand.vmem [shape: bf16[32,256], index: 1, kind: input, shape index: {}]   ;;  %s526_s2 = inlined_call_operand.vmem [shape: f32[1,256], index: 2, kind: input, shape index: {}]   ;;  %s527_s3 = inlined_call_operand.vmem [shape: bf16[256,64], index: 3, kind: input, shape index: {}]   ;;  %s528_s4 = inlined_call_operand.vmem [shape: f32[1,64], index: 4, kind: input, shape index: {}]   ;;  %s529_s5 = inlined_call_operand.hbm [shape: f32[16,64], index: 5, kind: output, shape index: {}]  }
   0x1   :  { %v367_v0 = vld [vmem:[%s525_s1 + $0x14] ss:$8 sps:$4 sm:$0xff]   ;;  %v369_v1 = vld [vmem:[%s525_s1 + $0x10] ss:$8 sps:$4 sm:$0xff]   ;;  %97 = vmatprep.mubr.bf16.mxu0 %v415_v2  ;;  %v370_v3 = vld [vmem:[%s525_s1 + $0x4] ss:$8 sps:$4 sm:$0xff]  }
   0x2   :  { %77 = vmatprep.subr.bf16.mxu0 %v367_v0  ;;  %v372_v4 = vld [vmem:[%s525_s1] ss:$8 sps:$4 sm:$0xff]   ;;  %v373_v7 = vld [vmem:[%s527_s3 + $0x78] sm:$0xff]   ;;  %v375_v10 = vld [vmem:[%s527_s3 + $0x70] sm:$0xff]  }
   0x3   :  { %v22_v5 = vld [vmem:[%s524_s0] sm:$0xff]  ;;  %78 = vmatpush1.bf16.msra.mxu0 %v369_v1  ;;  %v23_v6 = vld [vmem:[%s524_s0 + $0x8] sm:$0xff]  ;;  %v374_v8 = vld [vmem:[%s527_s3 + $0x38] sm:$0xff]   ;;  %341 = vmatprep.subr.bf16.mxu1 %v373_v7 }
   0x4   :  { %79 = vmatprep.subr.bf16.mxu0 %v370_v3  ;;  %v24_v9 = vpack.c.bf16 %v23_v6, %v22_v5  ;;  %342 = vmatpush3.bf16.msra.mxu1 %v374_v8  ;;  %v376_v11 = vld [vmem:[%s527_s3 + $0x30] sm:$0xff]   ;;  %v377_v12 = vld [vmem:[%s527_s3 + $0x68] sm:$0xff]   ;;  %v379_v14 = vld [vmem:[%s527_s3 + $0x60] sm:$0xff]  }
   0x5   :  { %343 = vmatprep.subr.bf16.mxu1 %v375_v10  ;;  %v378_v13 = vld [vmem:[%s527_s3 + $0x28] sm:$0xff]   ;;  %v380_v15 = vld [vmem:[%s527_s3 + $0x20] sm:$0xff]   ;;  %v381_v16 = vld [vmem:[%s527_s3 + $0x58] sm:$0xff]  }
   0x7   :  { %80 = vmatpush1.bf16.msra.mxu0 %v372_v4 }
   0x8   :  { %344 = vmatpush3.bf16.msra.mxu1 %v376_v11 }
   0x9   :  { %345 = vmatprep.subr.bf16.mxu1 %v377_v12 }
   0xa   :  { %323 = vmatmul.mubr.msk.bf16.vlgmr.msra.gmra.mxu0 %vm61_vm0, %v24_v9 }
   0xc   :  { %346 = vmatpush3.bf16.msra.mxu1 %v378_v13 }
   0xd   :  { %347 = vmatprep.subr.bf16.mxu1 %v379_v14 }
   0xe   :  { %10 = vsyncpa [#allocation3], 0  ;;  %v382_v17 = vld [vmem:[%s527_s3 + $0x18] sm:$0xff]   ;;  %v383_v18 = vld [vmem:[%s527_s3 + $0x50] sm:$0xff]   ;;  %v31_v24 = vlaneseq  ;;  %vm300_vm5 = vcmask 523264   ;;  %s416_s0 = smov [#allocation2]  }
   0xf   :  { %v384_v19 = vld [vmem:[%s527_s3 + $0x10] sm:$0xff]   ;;  %v385_v20 = vld [vmem:[%s527_s3 + $0x48] sm:$0xff]   ;;  %v387_v22 = vld [vmem:[%s527_s3 + $0x40] sm:$0xff]   ;;  %s308_s11 = sshll.u32 %s416_s0, 4  ;;  %s309_s11 = int_to_ptr.vmem [resolvable:$true] %s308_s11 }
  0x10   :  { %348 = vmatpush3.bf16.msra.mxu1 %v380_v15  ;;  %v386_v21 = vld [vmem:[%s527_s3 + $0x8] sm:$0xff]   ;;  %v388_v23 = vld [vmem:[%s527_s3] sm:$0xff]   ;;  %v32_v25 = vshrl.u32 %v31_v24, 7  ;;  %s393_s12 = scalar_lea.vmem %s309_s11, 256  ;;  %p398_p1 = scmp.lt.s32.totalorder %s309_s11, %s309_s11 }
  0x11   :  { %349 = vmatprep.subr.bf16.mxu1 %v381_v16  ;;  %v29_v28 = vld [vmem:[%s526_s2] sm:$0x3]  ;;  %p394_p0 = scmp.ne.s32.totalorder %s309_s11, %s393_s12  ;;  %p399_p2 = scmp.lt.s32.totalorder %s393_s12, %s393_s12 }
  0x12   :  { %v37_v26 = vsub.s32 1, %v32_v25  ;;  %v33_v27 = vsub.s32 0, %v32_v25  ;;  %v324_v50 = vld [vmem:[%s528_s4] ss:$0 sm:$0xff] }
  0x13   :  { %p400_p3 = por %p399_p2, %p398_p1 }
  0x14   :  { %350 = vmatpush3.bf16.msra.mxu1 %v382_v17  ;;  %v38_v29 = vrot.slane %v29_v28, %v37_v26  ;;  %v34_v30 = vrot.slane %v29_v28, %v33_v27 }
  0x15   :  { %351 = vmatprep.subr.bf16.mxu1 %v383_v18  ;;  %p401_p4 = pnand %p400_p3, %p394_p0 }
  0x18   :  { %352 = vmatpush3.bf16.msra.mxu1 %v384_v19 }
  0x19   :  { %353 = vmatprep.subr.bf16.mxu1 %v385_v20 }
  0x1c   :  { %354 = vmatpush3.bf16.msra.mxu1 %v386_v21 }
  0x1d   :  { %355 = vmatprep.subr.bf16.mxu1 %v387_v22 }
  0x20   :  { %356 = vmatpush3.bf16.msra.mxu1 %v388_v23 }
  0xca   :  { %v99_v31 = vpop.f32.mrf.mxu0 }
  0xcb   :  { %v100_v34 = vadd.f32 %v99_v31, %v34_v30 }
  0xcc   :  { %v101_v32 = vpop.f32.mrf.mxu0 }
  0xcd   :  { %v102_v33 = vadd.f32 %v101_v32, %v38_v29  ;;  %v112_v41 = vmul.f32 0.1, %v100_v34  ;;  %vm108_vm3 = vcmp.gt.f32.partialorder %v100_v34, 0.0 }
  0xce   :  { %v103_v35 = vpop.f32.mrf.mxu0 }
  0xcf   :  { %v104_v36 = vadd.f32 %v103_v35, %v34_v30  ;;  %v113_v38 = vmul.f32 0.1, %v102_v33  ;;  %vm109_vm2 = vcmp.gt.f32.partialorder %v102_v33, 0.0  ;;  %v116_v47 = vsel %vm108_vm3, %v100_v34, %v112_v41 }
  0xd0   :  { %v105_v37 = vpop.f32.mrf.mxu0 }
  0xd1   :  { %vm110_vm1 = vcmp.gt.f32.partialorder %v104_v36, 0.0  ;;  %v114_v39 = vmul.f32 0.1, %v104_v36  ;;  %v106_v40 = vadd.f32 %v105_v37, %v38_v29  ;;  %v117_v44 = vsel %vm109_vm2, %v102_v33, %v113_v38 }
  0xd3   :  { %v115_v42 = vmul.f32 0.1, %v106_v40  ;;  %vm111_vm4 = vcmp.gt.f32.partialorder %v106_v40, 0.0  ;;  %v118_v43 = vsel %vm110_vm1, %v104_v36, %v114_v39 }
  0xd4   :  { %v120_v48 = vpack.c.bf16 %v118_v43, %v116_v47 }
  0xd5   :  { %v119_v45 = vsel %vm111_vm4, %v106_v40, %v115_v42 }
  0xd6   :  { %v121_v46 = vpack.c.bf16 %v119_v45, %v117_v44 }
  0xd8   :  { %289 = vmatprep.mubr.bf16.mxu1 %v121_v46 }
  0xd9   :  { %290 = vmatmul.mubr.bf16.vlgmr.msra.gmra.mxu1 %v120_v48 }
 0x199   :  { %v357_v49 = vpop.f32.mrf.mxu1 }
 0x19b   :  { %v358_v51 = vpop.f32.mrf.mxu1 }
 0x19c   :  { %v359_v52 = vadd.f32 %v358_v51, %v357_v49 }
 0x19d   :  { %v360_v53 = vpop.f32.mrf.mxu1 }
 0x19e   :  { %v292_v54 = vadd.f32 %v359_v52, %v324_v50 }
 0x19f   :  { %v361_v55 = vpop.f32.mrf.mxu1 }
 0x1a0   :  { %389 = vtanh.f32 %v292_v54  ;;  %v362_v56 = vadd.f32 %v361_v55, %v360_v53 }
 0x1a2   :  { %v295_v57 = vadd.f32 %v362_v56, %v324_v50 }
 0x1a4   :  { %391 = vtanh.f32 %v295_v57 }
 0x1ad   :  { %v390_v58 = vpop.eup %389 }
 0x1ae   :  { %301 = vst.msk [vmem:[#allocation2] sm:$0xff] %vm300_vm5, %v390_v58 }
 0x1b1   :  { %v392_v59 = vpop.eup %391 }
 0x1b2   :  { %302 = vst.msk [vmem:[#allocation2 + $0x8] sm:$0xff] %vm300_vm5, %v392_v59 }
 0x1b3   :  { %404 = shalt.err (!%p401_p4)
}
 0x1b4   :  { %s417_s4 = smov 128   ;;  %s418_s13 = smov 8  }
 0x1b5   :  { %314 = dma.vmem_to_hbm [thread:$0]  %s309_s11, 256, %s529_s5, [#allocation3], %s417_s4, %s417_s4, %s418_s13  }
 0x1b6   :  { %413 = dma.done.wait [#allocation3], 256  }
 0x1b7   :  { %414 = vsyncadd [#allocation3], 4294967040 }
 0x1b8   :  { %318 = vsyncpa [#allocation3], 1 }

</bundles_post_ra>
